<compile_context>
chip_gen: v7x
topology: tpu7x:2x2x1
jax: 0.10.0
libtpu: 0.0.40
codegen_flags: <defaults>
</compile_context>

<pallas_src>
import numpy as np
import jax
import jax.numpy as jnp
from jax import lax
from jax.experimental import pallas as pl
from jax.experimental.pallas import tpu as pltpu


def _mlp_kernel(x_ref, w0_ref, b0_ref, w1_ref, b1_ref,
                w2_ref, b2_ref, w3c_ref, b3_ref, o_ref):
    # X tile in its natural (tb, nFeat) layout; bf16 operands -> single-pass MXU.
    x = x_ref[...].astype(jnp.bfloat16)

    # dense0 + relu: contract nFeat on the last dim of both operands
    # (flash-attention-style transposed matmul) so the result lands as
    # (nHid1, tb) with the batch on lanes -- no explicit transpose of X.
    h = lax.dot_general(w0_ref[...], x, (((1,), (1,)), ((), ())),
                        preferred_element_type=jnp.float32)
    h = jnp.maximum(h + b0_ref[...], 0.0)                      # (nHid1, tb) f32
    # (dropout == identity in eval mode)

    # dense1 + relu
    h = jnp.dot(w1_ref[...], h.astype(jnp.bfloat16),
                preferred_element_type=jnp.float32)
    h = jnp.maximum(h + b1_ref[...], 0.0)                      # (nHid3, tb) f32
    # (dropout == identity in eval mode)

    # dense2 + relu
    h = jnp.dot(w2_ref[...], h.astype(jnp.bfloat16),
                preferred_element_type=jnp.float32)
    h = jnp.maximum(h + b2_ref[...], 0.0)                      # (nHid2, tb) f32

    # output layer (1, nHid2) x (nHid2, tb): too small to be worth another MXU
    # pass -- VPU broadcast-multiply + XLU sublane reduce (idle slots), in f32.
    y = jnp.sum(h * w3c_ref[...], axis=0, keepdims=True) + b3_ref[...]
    o_ref[...] = y.astype(o_ref.dtype)                         # lane-dense (1, tb)


def _round_up(n, m):
    return ((n + m - 1) // m) * m


def nnreg_deep_forward(x, params, *, batch_tile=8192):
    """Fused MLP forward.

    x: (B, nFeat) float32, module-native layout (consumed directly; no
       wrapper-side transpose/copy of X).
    params: (W0, b0, W1, b1, W2, b2, W3, b3) with W in PyTorch (out, in)
       layout and b as (out, 1) columns (or (out,) vectors).
    Returns (B, 1) float32, matching the nn.Module output.
    """
    B, nFeat = x.shape
    w0, b0, w1, b1, w2, b2, w3, b3 = params
    nHid1 = w0.shape[0]
    nHid3 = w1.shape[0]
    nHid2 = w2.shape[0]

    # ---- batch tiling ------------------------------------------------------
    # tb: multiple of 512 lanes, capped at 8K so the lane-padded (tb, nFeat)
    # X block (double-buffered) plus f32 intermediates stay well under every
    # generation's scoped-VMEM budget.
    tb_cap = _round_up(min(max(int(batch_tile), 512), 8192), 512)
    # >= 4 steps when the batch allows it: >= 2 per TensorCore under v7x
    # megacore sharding and input/output double-buffering on 1-TC chips.
    n_steps = max(4, pl.cdiv(B, tb_cap))
    tb = min(tb_cap, _round_up(pl.cdiv(B, n_steps), 512))
    grid = pl.cdiv(B, tb)
    B_pad = grid * tb

    # Ragged last blocks are handled by Pallas boundary masking (garbage lanes
    # never mix with valid lanes and are sliced off below); only the tiny
    # B < tb case needs a real pad (a block may not be taller than the array).
    x_in = x if B >= tb else jnp.pad(x, ((0, tb - B), (0, 0)))

    # bf16 matmul operands (single-pass MXU); biases / final layer stay f32.
    w0b = w0.astype(jnp.bfloat16)
    w1b = w1.astype(jnp.bfloat16)
    w2b = w2.astype(jnp.bfloat16)
    w3c = w3.reshape(nHid2, 1).astype(jnp.float32)     # column for the VPU path
    b0c = b0.reshape(nHid1, 1).astype(jnp.float32)
    b1c = b1.reshape(nHid3, 1).astype(jnp.float32)
    b2c = b2.reshape(nHid2, 1).astype(jnp.float32)
    b3c = b3.reshape(1, 1).astype(jnp.float32)

    def full_spec(shape):
        # Tiny weights/biases: constant-index full blocks, resident across the grid.
        return pl.BlockSpec(shape, lambda i: (0, 0))

    out = pl.pallas_call(
        _mlp_kernel,
        out_shape=jax.ShapeDtypeStruct((1, B_pad), jnp.float32),
        grid_spec=pltpu.PrefetchScalarGridSpec(
            num_scalar_prefetch=0,
            grid=(grid,),
            in_specs=[
                pl.BlockSpec((tb, nFeat), lambda i: (i, 0)),   # X, natural layout, batch-tiled
                full_spec((nHid1, nFeat)), full_spec((nHid1, 1)),
                full_spec((nHid3, nHid1)), full_spec((nHid3, 1)),
                full_spec((nHid2, nHid3)), full_spec((nHid2, 1)),
                full_spec((nHid2, 1)),     full_spec((1, 1)),
            ],
            out_specs=pl.BlockSpec((1, tb), lambda i: (0, i)),  # lane-dense output tile
        ),
        compiler_params=pltpu.CompilerParams(
            dimension_semantics=("parallel",),        # megacore-shardable on v7x
            vmem_limit_bytes=40 * 1024 * 1024,        # headroom over v5e's 16 MiB default
        ),
    )(x_in, w0b, b0c, w1b, b1c, w2b, b2c, w3c, b3c)

    # Back to the module's (B, 1) output layout, dropping the padded tail.
    return out[0, :B].reshape(B, 1)


def init_params(key, nFeat, nHid1=20, nHid2=10):
    """Deterministic PyTorch-Linear-style init: U(-1/sqrt(fan_in), 1/sqrt(fan_in)).
    Weights are (out_features, in_features); biases are (out_features, 1)."""
    nHid3 = int(np.ceil(0.5 * (nHid1 + nHid2)))
    dims = [(nFeat, nHid1), (nHid1, nHid3), (nHid3, nHid2), (nHid2, 1)]
    params = []
    for (fan_in, fan_out) in dims:
        key, kw, kb = jax.random.split(key, 3)
        bound = 1.0 / np.sqrt(fan_in)
        w = jax.random.uniform(kw, (fan_out, fan_in), jnp.float32, -bound, bound)
        b = jax.random.uniform(kb, (fan_out, 1), jnp.float32, -bound, bound)
        params += [w, b]
    return tuple(params)


def reference_forward(x, params, *, matmul_dtype=jnp.float32):
    """Pure-JAX reference.  matmul_dtype=bfloat16 mirrors the kernel's
    bf16-operand / f32-accumulate matmuls for a tight numerical check;
    float32 gives the exact module semantics (looser tolerance vs kernel)."""
    w0, b0, w1, b1, w2, b2, w3, b3 = params

    def lin(h, w, b):
        return jnp.dot(h.astype(matmul_dtype), w.astype(matmul_dtype).T,
                       preferred_element_type=jnp.float32) + b.reshape(1, -1)

    h = jnp.maximum(lin(x, w0, b0), 0.0)
    h = jnp.maximum(lin(h, w1, b1), 0.0)
    h = jnp.maximum(lin(h, w2, b2), 0.0)
    return jnp.dot(h, w3.T) + b3.reshape(1, -1)     # final layer in f32 (as in kernel)


if __name__ == "__main__":
    key = jax.random.PRNGKey(0)
    kx, kp, kx2 = jax.random.split(key, 3)

    B, nFeat = 8, 16
    x = jax.random.normal(kx, (B, nFeat), jnp.float32)
    params = init_params(kp, nFeat, nHid1=20, nHid2=10)

    out = jax.block_until_ready(nnreg_deep_forward(x, params))
    assert out.shape == (B, 1)
    # Tight check: reference that mirrors the kernel's bf16-operand matmuls.
    np.testing.assert_allclose(
        np.asarray(out),
        np.asarray(reference_forward(x, params, matmul_dtype=jnp.bfloat16)),
        rtol=1e-4, atol=1e-4)
    # Module-semantics (pure f32) check: bf16 MXU operands => relaxed tolerance.
    np.testing.assert_allclose(
        np.asarray(out), np.asarray(reference_forward(x, params)),
        rtol=5e-2, atol=5e-2)

    # Ragged multi-tile batch: exercises the cdiv grid, the partially
    # out-of-bounds last block (no wrapper pad/copy of X) and the multi-step
    # "parallel" batch axis (megacore-shardable on v7x).
    B2 = 1300
    x2 = jax.random.normal(kx2, (B2, nFeat), jnp.float32)
    out2 = jax.block_until_ready(nnreg_deep_forward(x2, params, batch_tile=512))
    assert out2.shape == (B2, 1)
    np.testing.assert_allclose(
        np.asarray(out2),
        np.asarray(reference_forward(x2, params, matmul_dtype=jnp.bfloat16)),
        rtol=1e-4, atol=1e-4)
    np.testing.assert_allclose(
        np.asarray(out2), np.asarray(reference_forward(x2, params)),
        rtol=5e-2, atol=5e-2)

    print("KERNEL_OK")
</pallas_src>

<mosaic_0001>
module attributes {stable_mosaic.version = 11 : i64} {
  func.func @_mlp_kernel(%arg0: i32, %arg1: memref<512x16xf32, #tpu.memory_space<vmem>>, %arg2: memref<20x16xbf16, #tpu.memory_space<vmem>>, %arg3: memref<20x1xf32, #tpu.memory_space<vmem>>, %arg4: memref<15x20xbf16, #tpu.memory_space<vmem>>, %arg5: memref<15x1xf32, #tpu.memory_space<vmem>>, %arg6: memref<10x15xbf16, #tpu.memory_space<vmem>>, %arg7: memref<10x1xf32, #tpu.memory_space<vmem>>, %arg8: memref<10x1xf32, #tpu.memory_space<vmem>>, %arg9: memref<1x1xf32, #tpu.memory_space<vmem>>, %arg10: memref<1x512xf32, #tpu.memory_space<vmem>>) attributes {dimension_semantics = [#tpu.dimension_semantics<parallel>], iteration_bounds = array<i64: 1>, scalar_prefetch = 0 : i64, scratch_operands = 0 : i64, tpu.core_type = #tpu.core_type<tc>, window_params = [{transform_indices = @transform_0, window_bounds = array<i64: 512, 16>}, {pipeline_mode = #tpu.pipeline_mode<synchronous>, transform_indices = @transform_1, window_bounds = array<i64: 20, 16>}, {pipeline_mode = #tpu.pipeline_mode<synchronous>, transform_indices = @transform_2, window_bounds = array<i64: 20, 1>}, {pipeline_mode = #tpu.pipeline_mode<synchronous>, transform_indices = @transform_3, window_bounds = array<i64: 15, 20>}, {pipeline_mode = #tpu.pipeline_mode<synchronous>, transform_indices = @transform_4, window_bounds = array<i64: 15, 1>}, {pipeline_mode = #tpu.pipeline_mode<synchronous>, transform_indices = @transform_5, window_bounds = array<i64: 10, 15>}, {pipeline_mode = #tpu.pipeline_mode<synchronous>, transform_indices = @transform_6, window_bounds = array<i64: 10, 1>}, {pipeline_mode = #tpu.pipeline_mode<synchronous>, transform_indices = @transform_7, window_bounds = array<i64: 10, 1>}, {pipeline_mode = #tpu.pipeline_mode<synchronous>, transform_indices = @transform_8, window_bounds = array<i64: 1, 1>}, {transform_indices = @transform_9, window_bounds = array<i64: 1, 512>}]} {
    %c0 = arith.constant 0 : index
    %c0_0 = arith.constant 0 : index
    %0 = vector.load %arg1[%c0, %c0_0] : memref<512x16xf32, #tpu.memory_space<vmem>>, vector<512x16xf32>
    %1 = arith.truncf %0 : vector<512x16xf32> to vector<512x16xbf16>
    %c0_1 = arith.constant 0 : index
    %c0_2 = arith.constant 0 : index
    %2 = vector.load %arg2[%c0_1, %c0_2] : memref<20x16xbf16, #tpu.memory_space<vmem>>, vector<20x16xbf16>
    %cst = arith.constant dense<0.000000e+00> : vector<20x512xf32>
    %3 = tpu.matmul %2, %1, %cst {dimension_numbers = #tpu.dot_dimension_numbers<[1], [1], [0], [0], [0, 0, 1, 0], [], []>} : vector<20x16xbf16>, vector<512x16xbf16>, vector<20x512xf32> -> vector<20x512xf32>
    %c0_3 = arith.constant 0 : index
    %c0_4 = arith.constant 0 : index
    %4 = vector.load %arg3[%c0_3, %c0_4] : memref<20x1xf32, #tpu.memory_space<vmem>>, vector<20x1xf32>
    %5 = vector.broadcast %4 : vector<20x1xf32> to vector<20x512xf32>
    %6 = arith.addf %3, %5 : vector<20x512xf32>
    %cst_5 = arith.constant 0.000000e+00 : f32
    %7 = vector.broadcast %cst_5 : f32 to vector<20x512xf32>
    %8 = arith.maximumf %6, %7 : vector<20x512xf32>
    %c0_6 = arith.constant 0 : index
    %c0_7 = arith.constant 0 : index
    %9 = vector.load %arg4[%c0_6, %c0_7] : memref<15x20xbf16, #tpu.memory_space<vmem>>, vector<15x20xbf16>
    %10 = arith.truncf %8 : vector<20x512xf32> to vector<20x512xbf16>
    %cst_8 = arith.constant dense<0.000000e+00> : vector<15x512xf32>
    %11 = tpu.matmul %9, %10, %cst_8 {dimension_numbers = #tpu.dot_dimension_numbers<[1], [0], [0], [1], [0, 0, 1, 1], [], []>} : vector<15x20xbf16>, vector<20x512xbf16>, vector<15x512xf32> -> vector<15x512xf32>
    %c0_9 = arith.constant 0 : index
    %c0_10 = arith.constant 0 : index
    %12 = vector.load %arg5[%c0_9, %c0_10] : memref<15x1xf32, #tpu.memory_space<vmem>>, vector<15x1xf32>
    %13 = vector.broadcast %12 : vector<15x1xf32> to vector<15x512xf32>
    %14 = arith.addf %11, %13 : vector<15x512xf32>
    %cst_11 = arith.constant 0.000000e+00 : f32
    %15 = vector.broadcast %cst_11 : f32 to vector<15x512xf32>
    %16 = arith.maximumf %14, %15 : vector<15x512xf32>
    %c0_12 = arith.constant 0 : index
    %c0_13 = arith.constant 0 : index
    %17 = vector.load %arg6[%c0_12, %c0_13] : memref<10x15xbf16, #tpu.memory_space<vmem>>, vector<10x15xbf16>
    %18 = arith.truncf %16 : vector<15x512xf32> to vector<15x512xbf16>
    %cst_14 = arith.constant dense<0.000000e+00> : vector<10x512xf32>
    %19 = tpu.matmul %17, %18, %cst_14 {dimension_numbers = #tpu.dot_dimension_numbers<[1], [0], [0], [1], [0, 0, 1, 1], [], []>} : vector<10x15xbf16>, vector<15x512xbf16>, vector<10x512xf32> -> vector<10x512xf32>
    %c0_15 = arith.constant 0 : index
    %c0_16 = arith.constant 0 : index
    %20 = vector.load %arg7[%c0_15, %c0_16] : memref<10x1xf32, #tpu.memory_space<vmem>>, vector<10x1xf32>
    %21 = vector.broadcast %20 : vector<10x1xf32> to vector<10x512xf32>
    %22 = arith.addf %19, %21 : vector<10x512xf32>
    %cst_17 = arith.constant 0.000000e+00 : f32
    %23 = vector.broadcast %cst_17 : f32 to vector<10x512xf32>
    %24 = arith.maximumf %22, %23 : vector<10x512xf32>
    %c0_18 = arith.constant 0 : index
    %c0_19 = arith.constant 0 : index
    %25 = vector.load %arg8[%c0_18, %c0_19] : memref<10x1xf32, #tpu.memory_space<vmem>>, vector<10x1xf32>
    %26 = vector.broadcast %25 : vector<10x1xf32> to vector<10x512xf32>
    %27 = arith.mulf %24, %26 : vector<10x512xf32>
    %cst_20 = arith.constant dense<0.000000e+00> : vector<512xf32>
    %28 = vector.multi_reduction <add>, %27, %cst_20 [0] : vector<10x512xf32> to vector<512xf32>
    %29 = vector.shape_cast %28 : vector<512xf32> to vector<1x512xf32>
    %c0_21 = arith.constant 0 : index
    %c0_22 = arith.constant 0 : index
    %30 = vector.load %arg9[%c0_21, %c0_22] : memref<1x1xf32, #tpu.memory_space<vmem>>, vector<1x1xf32>
    %31 = vector.broadcast %30 : vector<1x1xf32> to vector<1x512xf32>
    %32 = arith.addf %29, %31 : vector<1x512xf32>
    %c0_23 = arith.constant 0 : index
    %c0_24 = arith.constant 0 : index
    %33 = vector.load %arg10[%c0_23, %c0_24] : memref<1x512xf32, #tpu.memory_space<vmem>>, vector<1x512xf32>
    tpu.vector_store %arg10[%c0_23, %c0_24], %32 {strides = array<i32>} : memref<1x512xf32, #tpu.memory_space<vmem>>, vector<1x512xf32>,
    return
  }
  func.func @transform_0(%arg0: i32) -> (i32, i32) {
    %c0_i32 = arith.constant 0 : i32
    %c0_i32_0 = arith.constant 0 : i32
    return %arg0, %c0_i32 : i32, i32
  }
  func.func @transform_1(%arg0: i32) -> (i32, i32) {
    %c0_i32 = arith.constant 0 : i32
    %c0_i32_0 = arith.constant 0 : i32
    %c0_i32_1 = arith.constant 0 : i32
    return %c0_i32, %c0_i32_0 : i32, i32
  }
  func.func @transform_2(%arg0: i32) -> (i32, i32) {
    %c0_i32 = arith.constant 0 : i32
    %c0_i32_0 = arith.constant 0 : i32
    %c0_i32_1 = arith.constant 0 : i32
    return %c0_i32, %c0_i32_0 : i32, i32
  }
  func.func @transform_3(%arg0: i32) -> (i32, i32) {
    %c0_i32 = arith.constant 0 : i32
    %c0_i32_0 = arith.constant 0 : i32
    %c0_i32_1 = arith.constant 0 : i32
    return %c0_i32, %c0_i32_0 : i32, i32
  }
  func.func @transform_4(%arg0: i32) -> (i32, i32) {
    %c0_i32 = arith.constant 0 : i32
    %c0_i32_0 = arith.constant 0 : i32
    %c0_i32_1 = arith.constant 0 : i32
    return %c0_i32, %c0_i32_0 : i32, i32
  }
  func.func @transform_5(%arg0: i32) -> (i32, i32) {
    %c0_i32 = arith.constant 0 : i32
    %c0_i32_0 = arith.constant 0 : i32
    %c0_i32_1 = arith.constant 0 : i32
    return %c0_i32, %c0_i32_0 : i32, i32
  }
  func.func @transform_6(%arg0: i32) -> (i32, i32) {
    %c0_i32 = arith.constant 0 : i32
    %c0_i32_0 = arith.constant 0 : i32
    %c0_i32_1 = arith.constant 0 : i32
    return %c0_i32, %c0_i32_0 : i32, i32
  }
  func.func @transform_7(%arg0: i32) -> (i32, i32) {
    %c0_i32 = arith.constant 0 : i32
    %c0_i32_0 = arith.constant 0 : i32
    %c0_i32_1 = arith.constant 0 : i32
    return %c0_i32, %c0_i32_0 : i32, i32
  }
  func.func @transform_8(%arg0: i32) -> (i32, i32) {
    %c0_i32 = arith.constant 0 : i32
    %c0_i32_0 = arith.constant 0 : i32
    %c0_i32_1 = arith.constant 0 : i32
    return %c0_i32, %c0_i32_0 : i32, i32
  }
  func.func @transform_9(%arg0: i32) -> (i32, i32) {
    %c0_i32 = arith.constant 0 : i32
    %c0_i32_0 = arith.constant 0 : i32
    return %c0_i32, %arg0 : i32, i32
  }
}

</mosaic_0001>

<bundles_post_ra>
// kernel: tpu_custom_call.1
= control target key start
LH: loop header
LB: loop body
LE: loop exit
PB: predicated region body
PF: predicated region fallthrough
CT: control target
= control target key end

     0   :  { %s1231_s0 = inlined_call_operand.vmem [shape: f32[512,16], index: 0, kind: input, shape index: {}]   ;;  %s1232_s1 = inlined_call_operand.vmem [shape: bf16[20,16], index: 1, kind: input, shape index: {}]   ;;  %s1233_s2 = inlined_call_operand.vmem [shape: f32[20,1], index: 2, kind: input, shape index: {}]   ;;  %s1234_s3 = inlined_call_operand.vmem [shape: bf16[15,20], index: 3, kind: input, shape index: {}]   ;;  %s1235_s4 = inlined_call_operand.vmem [shape: f32[15,1], index: 4, kind: input, shape index: {}]   ;;  %s1236_s5 = inlined_call_operand.vmem [shape: bf16[10,15], index: 5, kind: input, shape index: {}]   ;;  %s1237_s6 = inlined_call_operand.vmem [shape: f32[10,1], index: 6, kind: input, shape index: {}]   ;;  %s1238_s7 = inlined_call_operand.vmem [shape: f32[10,1], index: 7, kind: input, shape index: {}]   ;;  %s1239_s8 = inlined_call_operand.<no memory space> [shape: f32[1,1], index: 8, kind: input, shape index: {}]   ;;  %s1240_s9 = inlined_call_operand.hbm [shape: f32[1,512], index: 9, kind: output, shape index: {}]  }
   0x1   :  { %v14_v0 = vstv %s1239_s8 }
   0x2   :  { %15 = vst [vmem:[#allocation2] sm:$0x1] %v14_v0 }
   0x3   :  { %v52_v1 = vld [vmem:[%s1231_s0 + $0x80] sm:$0xff]  ;;  %v53_v2 = vld [vmem:[%s1231_s0 + $0x88] sm:$0xff]  ;;  %vm161_vm0 = vcmask 130048   ;;  %v871_v8 = vmov 0   ;;  %v54_v13 = vld [vmem:[%s1231_s0 + $0x90] sm:$0xff] }
   0x4   :  { %v84_v3 = vld [vmem:[%s1231_s0 + $0x180] sm:$0xff]  ;;  %v108_v4 = vpack.c.bf16 %v53_v2, %v52_v1  ;;  %v85_v5 = vld [vmem:[%s1231_s0 + $0x188] sm:$0xff]  ;;  %841 = vset.pattern.permute.xlu0 %v871_v8  ;;  %842 = vset.pattern.permute.xlu1 %v871_v8  ;;  %v55_v15 = vld [vmem:[%s1231_s0 + $0x98] sm:$0xff] }
   0x5   :  { %v36_v6 = vld [vmem:[%s1231_s0] sm:$0xff]  ;;  %v37_v7 = vld [vmem:[%s1231_s0 + $0x8] sm:$0xff]  ;;  %v124_v9 = vpack.c.bf16 %v85_v5, %v84_v3  ;;  %v86_v16 = vld [vmem:[%s1231_s0 + $0x190] sm:$0xff]  ;;  %v109_v19 = vpack.c.bf16 %v55_v15, %v54_v13 }
   0x6   :  { %v100_v10 = vpack.c.bf16 %v37_v7, %v36_v6  ;;  %v68_v11 = vld [vmem:[%s1231_s0 + $0x100] sm:$0xff]  ;;  %v69_v12 = vld [vmem:[%s1231_s0 + $0x108] sm:$0xff]  ;;  %821 = vmatprep.subr.msk.bf16.mxu0 %vm161_vm0, %v108_v4  ;;  %v87_v17 = vld [vmem:[%s1231_s0 + $0x198] sm:$0xff] }
   0x7   :  { %v116_v14 = vpack.c.bf16 %v69_v12, %v68_v11  ;;  %829 = vmatprep.subr.msk.bf16.mxu1 %vm161_vm0, %v124_v9  ;;  %v125_v20 = vpack.c.bf16 %v87_v17, %v86_v16  ;;  %v38_v21 = vld [vmem:[%s1231_s0 + $0x10] sm:$0xff]  ;;  %v39_v22 = vld [vmem:[%s1231_s0 + $0x18] sm:$0xff]  ;;  %v56_v28 = vld [vmem:[%s1231_s0 + $0xa0] sm:$0xff] }
   0x8   :  { %v169_v18 = vsel %vm161_vm0, %v100_v10, 0  ;;  %v70_v23 = vld [vmem:[%s1231_s0 + $0x110] sm:$0xff]  ;;  %v71_v25 = vld [vmem:[%s1231_s0 + $0x118] sm:$0xff]  ;;  %v101_v26 = vpack.c.bf16 %v39_v22, %v38_v21  ;;  %v57_v29 = vld [vmem:[%s1231_s0 + $0xa8] sm:$0xff] }
   0x9   :  { %782 = vmatpush3.bf16.xpose.msra.mxu0 %v169_v18  ;;  %v217_v24 = vsel %vm161_vm0, %v116_v14, 0  ;;  %v117_v27 = vpack.c.bf16 %v71_v25, %v70_v23  ;;  %v88_v30 = vld [vmem:[%s1231_s0 + $0x1a0] sm:$0xff]  ;;  %v89_v31 = vld [vmem:[%s1231_s0 + $0x1a8] sm:$0xff]  ;;  %v110_v33 = vpack.c.bf16 %v57_v29, %v56_v28  ;;  %v58_v42 = vld [vmem:[%s1231_s0 + $0xb0] sm:$0xff] }
   0xa   :  { %802 = vmatpush3.bf16.xpose.msra.mxu1 %v217_v24  ;;  %822 = vmatprep.subr.msk.bf16.mxu0 %vm161_vm0, %v109_v19  ;;  %v172_v32 = vsel %vm161_vm0, %v101_v26, 0  ;;  %v126_v35 = vpack.c.bf16 %v89_v31, %v88_v30  ;;  %v40_v36 = vld [vmem:[%s1231_s0 + $0x20] sm:$0xff]  ;;  %v41_v37 = vld [vmem:[%s1231_s0 + $0x28] sm:$0xff]  ;;  %v59_v43 = vld [vmem:[%s1231_s0 + $0xb8] sm:$0xff] }
   0xb   :  { %830 = vmatprep.subr.msk.bf16.mxu1 %vm161_vm0, %v125_v20  ;;  %v220_v34 = vsel %vm161_vm0, %v117_v27, 0  ;;  %v72_v38 = vld [vmem:[%s1231_s0 + $0x120] sm:$0xff]  ;;  %v73_v39 = vld [vmem:[%s1231_s0 + $0x128] sm:$0xff]  ;;  %v102_v40 = vpack.c.bf16 %v41_v37, %v40_v36  ;;  %v90_v44 = vld [vmem:[%s1231_s0 + $0x1b0] sm:$0xff]  ;;  %v111_v47 = vpack.c.bf16 %v59_v43, %v58_v42 }
   0xc   :  { %v118_v41 = vpack.c.bf16 %v73_v39, %v72_v38  ;;  %v91_v45 = vld [vmem:[%s1231_s0 + $0x1b8] sm:$0xff]  ;;  %v42_v48 = vld [vmem:[%s1231_s0 + $0x30] sm:$0xff]  ;;  %v1042_v56 = vld [vmem:[%s1232_s1] sm:$0xff]  }
   0xd   :  { %v175_v46 = vsel %vm161_vm0, %v102_v40, 0  ;;  %v43_v49 = vld [vmem:[%s1231_s0 + $0x38] sm:$0xff]  ;;  %v127_v51 = vpack.c.bf16 %v91_v45, %v90_v44  ;;  %v74_v52 = vld [vmem:[%s1231_s0 + $0x130] sm:$0xff]  ;;  %v60_v57 = vld [vmem:[%s1231_s0 + $0xc0] sm:$0xff]  ;;  %797 = vmatprep.mubr.msk.bf16.mxu0 %vm161_vm0, %v1042_v56  ;;  %817 = vmatprep.mubr.msk.bf16.mxu1 %vm161_vm0, %v1042_v56 }
   0xe   :  { %v223_v50 = vsel %vm161_vm0, %v118_v41, 0  ;;  %v75_v53 = vld [vmem:[%s1231_s0 + $0x138] sm:$0xff]  ;;  %v103_v54 = vpack.c.bf16 %v43_v49, %v42_v48  ;;  %v61_v58 = vld [vmem:[%s1231_s0 + $0xc8] sm:$0xff]  ;;  %v135_v59 = vld [vmem:[%s1233_s2] sm:$0xff] }
   0xf   :  { %v119_v55 = vpack.c.bf16 %v75_v53, %v74_v52  ;;  %v92_v60 = vld [vmem:[%s1231_s0 + $0x1c0] sm:$0xff]  ;;  %v93_v61 = vld [vmem:[%s1231_s0 + $0x1c8] sm:$0xff]  ;;  %v137_v62 = vld [vmem:[%s1233_s2 + $0x10] sm:$0xf]  ;;  %140 = vperm.xlu0 %841, %v135_v59   ;;  %v112_v3 = vpack.c.bf16 %v61_v58, %v60_v57 }
  0x10   :  { %v178_v63 = vsel %vm161_vm0, %v103_v54, 0  ;;  %v44_v0 = vld [vmem:[%s1231_s0 + $0x40] sm:$0xff]  ;;  %v45_v1 = vld [vmem:[%s1231_s0 + $0x48] sm:$0xff]  ;;  %150 = vperm.xlu1 %842, %v137_v62   ;;  %v128_v5 = vpack.c.bf16 %v93_v61, %v92_v60 }
  0x11   :  { %784 = vmatpush3.bf16.xpose.msra.mxu0 %v172_v32  ;;  %v226_v2 = vsel %vm161_vm0, %v119_v55, 0  ;;  %v136_v4 = vld [vmem:[%s1233_s2 + $0x8] sm:$0xff] }
  0x12   :  { %804 = vmatpush3.bf16.xpose.msra.mxu1 %v220_v34  ;;  %823 = vmatprep.subr.msk.bf16.mxu0 %vm161_vm0, %v110_v33 }
  0x13   :  { %831 = vmatprep.subr.msk.bf16.mxu1 %vm161_vm0, %v126_v35 }
  0x19   :  { %786 = vmatpush3.bf16.xpose.msra.mxu0 %v175_v46 }
  0x1a   :  { %806 = vmatpush3.bf16.xpose.msra.mxu1 %v223_v50  ;;  %824 = vmatprep.subr.msk.bf16.mxu0 %vm161_vm0, %v111_v47 }
  0x1b   :  { %832 = vmatprep.subr.msk.bf16.mxu1 %vm161_vm0, %v127_v51 }
  0x1c   :  { %16 = vsyncpa [#allocation4], 0  ;;  %v76_v6 = vld [vmem:[%s1231_s0 + $0x140] sm:$0xff]  ;;  %v77_v7 = vld [vmem:[%s1231_s0 + $0x148] sm:$0xff]  ;;  %145 = vperm.xlu0 %841, %v136_v4   ;;  %v104_v10 = vpack.c.bf16 %v45_v1, %v44_v0  ;;  %vm409_vm1 = vcmask 1041408   ;;  %vm405_vm2 = vcmask 162816  }
  0x1d   :  { %v388_v9 = vld [vmem:[%s1235_s4] sm:$0xff]  ;;  %v389_v11 = vld [vmem:[%s1235_s4 + $0x8] sm:$0x7f]  ;;  %v120_v12 = vpack.c.bf16 %v77_v7, %v76_v6  ;;  %v62_v13 = vld [vmem:[%s1231_s0 + $0xd0] sm:$0xff]  ;;  %vm543_vm3 = vcmask 1046528   ;;  %vm544_vm4 = vcmask 1047552  }
  0x1e   :  { %v63_v14 = vld [vmem:[%s1231_s0 + $0xd8] sm:$0xff]  ;;  %392 = vperm.xlu1 %842, %v388_v9   ;;  %v94_v15 = vld [vmem:[%s1231_s0 + $0x1d0] sm:$0xff]  ;;  %v523_v17 = vld [vmem:[%s1237_s6 + $0x8] sm:$0x3]  ;;  %v181_v18 = vsel %vm161_vm0, %v104_v10, 0  ;;  %vm539_vm5 = vcmask 121856  }
  0x1f   :  { %v95_v16 = vld [vmem:[%s1231_s0 + $0x1d8] sm:$0xff]  ;;  %v113_v19 = vpack.c.bf16 %v63_v14, %v62_v13  ;;  %v522_v20 = vld [vmem:[%s1237_s6] sm:$0xff]  ;;  %v229_v21 = vsel %vm161_vm0, %v120_v12, 0  ;;  %v46_v23 = vld [vmem:[%s1231_s0 + $0x50] sm:$0xff] }
  0x20   :  { %397 = vperm.xlu0 %841, %v389_v11   ;;  %v129_v22 = vpack.c.bf16 %v95_v16, %v94_v15  ;;  %v47_v24 = vld [vmem:[%s1231_s0 + $0x58] sm:$0xff]  ;;  %v78_v25 = vld [vmem:[%s1231_s0 + $0x150] sm:$0xff]  ;;  %v654_v27 = vld [vmem:[%s1238_s7 + $0x8] sm:$0x3] }
  0x21   :  { %788 = vmatpush3.bf16.xpose.msra.mxu0 %v178_v63  ;;  %v79_v26 = vld [vmem:[%s1231_s0 + $0x158] sm:$0xff]  ;;  %v105_v28 = vpack.c.bf16 %v47_v24, %v46_v23  ;;  %v653_v29 = vld [vmem:[%s1238_s7] sm:$0xff]  ;;  %v65_v32 = vld [vmem:[%s1231_s0 + $0xe8] sm:$0xff] }
  0x22   :  { %808 = vmatpush3.bf16.xpose.msra.mxu1 %v226_v2  ;;  %825 = vmatprep.subr.msk.bf16.mxu0 %vm161_vm0, %v112_v3  ;;  %v121_v30 = vpack.c.bf16 %v79_v26, %v78_v25  ;;  %v64_v31 = vld [vmem:[%s1231_s0 + $0xe0] sm:$0xff]  ;;  %v97_v34 = vld [vmem:[%s1231_s0 + $0x1e8] sm:$0xff]  ;;  %v66_v46 = vld [vmem:[%s1231_s0 + $0xf0] sm:$0xff] }
  0x23   :  { %833 = vmatprep.subr.msk.bf16.mxu1 %vm161_vm0, %v128_v5  ;;  %531 = vperm.xlu1 %842, %v523_v17   ;;  %v96_v33 = vld [vmem:[%s1231_s0 + $0x1e0] sm:$0xff]  ;;  %v184_v36 = vsel %vm161_vm0, %v105_v28, 0  ;;  %v114_v37 = vpack.c.bf16 %v65_v32, %v64_v31  ;;  %v49_v41 = vld [vmem:[%s1231_s0 + $0x68] sm:$0xff]  ;;  %v67_v47 = vld [vmem:[%s1231_s0 + $0xf8] sm:$0xff] }
  0x24   :  { %526 = vperm.xlu0 %841, %v522_v20   ;;  %v705_v35 = vld [vmem:[#allocation2] sm:$0x1]  ;;  %v232_v38 = vsel %vm161_vm0, %v121_v30, 0  ;;  %v130_v39 = vpack.c.bf16 %v97_v34, %v96_v33  ;;  %v81_v43 = vld [vmem:[%s1231_s0 + $0x168] sm:$0xff]  ;;  %v98_v48 = vld [vmem:[%s1231_s0 + $0x1f0] sm:$0xff]  ;;  %v115_v51 = vpack.c.bf16 %v67_v47, %v66_v46 }
  0x25   :  { %v48_v40 = vld [vmem:[%s1231_s0 + $0x60] sm:$0xff]  ;;  %v99_v49 = vld [vmem:[%s1231_s0 + $0x1f8] sm:$0xff]  ;;  %v50_v54 = vld [vmem:[%s1231_s0 + $0x70] sm:$0xff] }
  0x26   :  { %v80_v42 = vld [vmem:[%s1231_s0 + $0x160] sm:$0xff]  ;;  %v106_v44 = vpack.c.bf16 %v49_v41, %v48_v40  ;;  %v131_v53 = vpack.c.bf16 %v99_v49, %v98_v48  ;;  %v51_v55 = vld [vmem:[%s1231_s0 + $0x78] sm:$0xff]  ;;  %v82_v57 = vld [vmem:[%s1231_s0 + $0x170] sm:$0xff] }
  0x27   :  { %662 = vperm.xlu1 %842, %v654_v27   ;;  %v122_v45 = vpack.c.bf16 %v81_v43, %v80_v42  ;;  %v83_v58 = vld [vmem:[%s1231_s0 + $0x178] sm:$0xff]  ;;  %v107_v59 = vpack.c.bf16 %v51_v55, %v50_v54  ;;  %v844_v63 = vld [vmem:[%s1232_s1 + $0x8] ss:$0 sps:$4 sm:$0x33]  }
  0x28   :  { %657 = vperm.xlu0 %841, %v653_v29   ;;  %v187_v50 = vsel %vm161_vm0, %v106_v44, 0  ;;  %v123_v60 = vpack.c.bf16 %v83_v58, %v82_v57 }
  0x29   :  { %790 = vmatpush3.bf16.xpose.msra.mxu0 %v181_v18  ;;  %v235_v52 = vsel %vm161_vm0, %v122_v45, 0  ;;  %v190_v61 = vsel %vm161_vm0, %v107_v59, 0 }
  0x2a   :  { %810 = vmatpush3.bf16.xpose.msra.mxu1 %v229_v21  ;;  %826 = vmatprep.subr.msk.bf16.mxu0 %vm161_vm0, %v113_v19  ;;  %v238_v62 = vsel %vm161_vm0, %v123_v60, 0 }
  0x2b   :  { %834 = vmatprep.subr.msk.bf16.mxu1 %vm161_vm0, %v129_v22  ;;  %708 = vperm.xlu1 %842, %v705_v35  }
  0x31   :  { %792 = vmatpush3.bf16.xpose.msra.mxu0 %v184_v36 }
  0x32   :  { %812 = vmatpush3.bf16.xpose.msra.mxu1 %v232_v38  ;;  %827 = vmatprep.subr.msk.bf16.mxu0 %vm161_vm0, %v114_v37 }
  0x33   :  { %835 = vmatprep.subr.msk.bf16.mxu1 %vm161_vm0, %v130_v39 }
  0x39   :  { %794 = vmatpush3.bf16.xpose.msra.mxu0 %v187_v50 }
  0x3a   :  { %814 = vmatpush3.bf16.xpose.msra.mxu1 %v235_v52  ;;  %828 = vmatprep.subr.msk.bf16.mxu0 %vm161_vm0, %v115_v51 }
  0x3b   :  { %836 = vmatprep.subr.msk.bf16.mxu1 %vm161_vm0, %v131_v53  ;;  %v845_v53 = vld [vmem:[%s1234_s3] sm:$0xff]  }
  0x41   :  { %796 = vmatpush3.bf16.xpose.msra.mxu0 %v190_v61 }
  0x42   :  { %816 = vmatpush3.bf16.xpose.msra.mxu1 %v238_v62 }
  0x48   :  { %798 = vmatmul.mubr.msk.bf16.vlgmr.msra.gmra.mrb[0].mxu0 %vm161_vm0, %v1042_v56 }
  0x49   :  { %818 = vmatmul.mubr.msk.bf16.vlgmr.msra.gmra.mrb[0].mxu1 %vm161_vm0, %v1042_v56  ;;  %799 = vmatprep.mubr.msk.bf16.mxu0 %vm161_vm0, %v844_v63 }
  0x4a   :  { %819 = vmatprep.mubr.msk.bf16.mxu1 %vm161_vm0, %v844_v63 }
  0x50   :  { %800 = vmatmul.mubr.msk.bf16.gmra.mrb[4].mxu0 %vm161_vm0, %v844_v63 }
  0x51   :  { %820 = vmatmul.mubr.msk.bf16.gmra.mrb[4].mxu1 %vm161_vm0, %v844_v63  ;;  %454 = vmatprep.mubr.bf16.mxu0 %v871_v8 }
  0x52   :  { %497 = vmatprep.mubr.bf16.mxu1 %v871_v8 }
  0x8e   :  { %v141_v0 = vpop.permute.xlu0 %140 }
  0x8f   :  { %v151_v27 = vpop.permute.xlu1 %150 }
  0x9b   :  { %v146_v1 = vpop.permute.xlu0 %145 }
  0x9d   :  { %v393_v54 = vpop.permute.xlu1 %392 }
  0x9f   :  { %v398_v55 = vpop.permute.xlu0 %397 }
 0x11b   :  { %v298_v2 = vpop.f32.mrb[0].mxu0 }
 0x11c   :  { %v299_v3 = vadd.f32 %v298_v2, %v141_v0  ;;  %v349_v4 = vpop.f32.mrb[0].mxu1  ;;  %v300_v5 = vpop.f32.mrb[1].mxu0 }
 0x11d   :  { %v350_v6 = vadd.f32 %v349_v4, %v141_v0  ;;  %v301_v56 = vadd.f32 %v300_v5, %v141_v0  ;;  %v351_v7 = vpop.f32.mrb[1].mxu1  ;;  %v302_v9 = vpop.f32.mrb[2].mxu0  ;;  %v872_v5 = vmov 65535  }
 0x11e   :  { %v352_v10 = vadd.f32 %v351_v7, %v141_v0  ;;  %v303_v11 = vadd.f32 %v302_v9, %v146_v1  ;;  %v353_v12 = vpop.f32.mrb[2].mxu1  ;;  %v304_v13 = vpop.f32.mrb[3].mxu0  ;;  %v366_v17 = vmax.f32 %v299_v3, 0.0 }
 0x11f   :  { %v354_v14 = vadd.f32 %v353_v12, %v146_v1  ;;  %v305_v15 = vadd.f32 %v304_v13, %v146_v1  ;;  %v355_v16 = vpop.f32.mrb[3].mxu1  ;;  %v368_v20 = vmax.f32 %v350_v6, 0.0  ;;  %v367_v21 = vmax.f32 %v301_v56, 0.0 }
 0x120   :  { %v370_v18 = vmax.f32 %v303_v11, 0.0  ;;  %v356_v19 = vadd.f32 %v355_v16, %v146_v1  ;;  %v369_v24 = vmax.f32 %v352_v10, 0.0  ;;  %v545_v6 = vsel %vm543_vm3, 4294967295, %v872_v5 }
 0x121   :  { %v372_v22 = vmax.f32 %v354_v14, 0.0  ;;  %v371_v23 = vmax.f32 %v305_v15, 0.0 }
 0x122   :  { %v380_v25 = vpack.c.bf16 %v370_v18, %v366_v17  ;;  %v373_v26 = vmax.f32 %v356_v19, 0.0  ;;  %v546_v18 = vsel %vm544_vm4, %v545_v6, 0 }
 0x123   :  { %v382_v28 = vpack.c.bf16 %v372_v22, %v368_v20  ;;  %v381_v29 = vpack.c.bf16 %v371_v23, %v367_v21  ;;  %v308_v30 = vpop.f32.mrb[4].mxu0 }
 0x124   :  { %v383_v31 = vpack.c.bf16 %v373_v26, %v369_v24  ;;  %v309_v32 = vadd.f32 %v308_v30, %v151_v27  ;;  %v359_v33 = vpop.f32.mrb[4].mxu1  ;;  %v310_v34 = vpop.f32.mrb[5].mxu0 }
 0x125   :  { %v360_v35 = vadd.f32 %v359_v33, %v151_v27  ;;  %v311_v36 = vadd.f32 %v310_v34, %v151_v27  ;;  %v361_v37 = vpop.f32.mrb[5].mxu1  ;;  %v312_v38 = vpop.f32.mrb[6].mxu0  ;;  %422 = vmatprep.subr.bf16.mxu0 %v381_v29 }
 0x126   :  { %v374_v39 = vmax.f32 %v309_v32, 0.0  ;;  %v362_v40 = vadd.f32 %v361_v37, %v151_v27  ;;  %v363_v41 = vpop.f32.mrb[6].mxu1  ;;  %465 = vmatprep.subr.bf16.mxu1 %v383_v31  ;;  %v313_v42 = vpop.f32.mrb[7].mxu0  ;;  %423 = vmatpush1.bf16.msra.mxu0 %v380_v25  ;;  %v846_v27 = vld [vmem:[%s1236_s5] sm:$0x1f]   ;;  %s874_s5 = smov [#allocation3]  }
 0x127   :  { %v376_v43 = vmax.f32 %v360_v35, 0.0  ;;  %v375_v44 = vmax.f32 %v311_v36, 0.0  ;;  %v364_v45 = vpop.f32.mrb[7].mxu1  ;;  %466 = vmatpush1.bf16.msra.mxu1 %v382_v28  ;;  %v532_v28 = vpop.permute.xlu1 %531  ;;  %s759_s20 = sshll.u32 %s874_s5, 4  ;;  %s760_s20 = int_to_ptr.vmem [resolvable:$true] %s759_s20 }
 0x128   :  { %v384_v46 = vpack.c.bf16 %v374_v39, %v374_v39  ;;  %v377_v47 = vmax.f32 %v362_v40, 0.0  ;;  %v527_v29 = vpop.permute.xlu0 %526  ;;  %s847_s4 = scalar_lea.vmem %s760_s20, 64  ;;  %p852_p1 = scmp.lt.s32.totalorder %s760_s20, %s760_s20 }
 0x129   :  { %v386_v48 = vpack.c.bf16 %v376_v43, %v376_v43  ;;  %v385_v49 = vpack.c.bf16 %v375_v44, %v375_v44  ;;  %p848_p0 = scmp.ne.s32.totalorder %s760_s20, %s847_s4  ;;  %p853_p2 = scmp.lt.s32.totalorder %s847_s4, %s847_s4 }
 0x12a   :  { %v387_v50 = vpack.c.bf16 %v377_v47, %v377_v47  ;;  %v411_v51 = vsel %vm409_vm1, %v384_v46, 0 }
 0x12b   :  { %774 = vmatprep.subr.msk.bf16.mxu0 %vm409_vm1, %v385_v49  ;;  %v417_v52 = vsel %vm409_vm1, %v386_v48, 0  ;;  %p854_p3 = por %p853_p2, %p852_p1 }
 0x12c   :  { %776 = vmatprep.subr.msk.bf16.mxu1 %vm409_vm1, %v387_v50  ;;  %425 = vmatpush1.bf16.msra.mxu0 %v411_v51  ;;  %v663_v50 = vpop.permute.xlu1 %662 }
 0x12d   :  { %468 = vmatpush1.bf16.msra.mxu1 %v417_v52  ;;  %p855_p4 = pnand %p854_p3, %p848_p0 }
 0x12f   :  { %775 = vmatmul.mubr.msk.bf16.vlgmr.msra.gmra.mrb[8].mxu0 %vm405_vm2, %v845_v53 }
 0x130   :  { %777 = vmatmul.mubr.msk.bf16.vlgmr.msra.gmra.mrb[8].mxu1 %vm405_vm2, %v845_v53  ;;  %591 = vmatprep.mubr.bf16.mxu0 %v871_v8 }
 0x131   :  { %634 = vmatprep.mubr.bf16.mxu1 %v871_v8 }
 0x202   :  { %v456_v57 = vpop.f32.mrb[8].mxu0 }
 0x203   :  { %v457_v58 = vadd.f32 %v456_v57, %v393_v54  ;;  %v499_v59 = vpop.f32.mrb[8].mxu1  ;;  %v458_v60 = vpop.f32.mrb[9].mxu0 }
 0x204   :  { %v500_v61 = vadd.f32 %v499_v59, %v393_v54  ;;  %v459_v62 = vadd.f32 %v458_v60, %v393_v54  ;;  %v501_v63 = vpop.f32.mrb[9].mxu1  ;;  %v460_v0 = vpop.f32.mrb[10].mxu0 }
 0x205   :  { %v502_v1 = vadd.f32 %v501_v63, %v393_v54  ;;  %v461_v2 = vadd.f32 %v460_v0, %v398_v55  ;;  %v503_v3 = vpop.f32.mrb[10].mxu1  ;;  %v462_v4 = vpop.f32.mrb[11].mxu0  ;;  %v508_v9 = vmax.f32 %v457_v58, 0.0  ;;  %v711_v58 = vlaneseq }
 0x206   :  { %v504_v56 = vadd.f32 %v503_v3, %v398_v55  ;;  %v463_v8 = vadd.f32 %v462_v4, %v398_v55  ;;  %v505_v7 = vpop.f32.mrb[11].mxu1  ;;  %v510_v12 = vmax.f32 %v500_v61, 0.0  ;;  %v509_v13 = vmax.f32 %v459_v62, 0.0  ;;  %v658_v54 = vpop.permute.xlu0 %657 }
 0x207   :  { %v512_v10 = vmax.f32 %v461_v2, 0.0  ;;  %v506_v11 = vadd.f32 %v505_v7, %v398_v55  ;;  %v511_v16 = vmax.f32 %v502_v1, 0.0  ;;  %vm750_vm6 = vcmp.lt.s32.totalorder %v711_v58, 512 }
 0x208   :  { %v514_v14 = vmax.f32 %v504_v56, 0.0  ;;  %v513_v15 = vmax.f32 %v463_v8, 0.0 }
 0x209   :  { %v518_v17 = vpack.c.bf16 %v512_v10, %v508_v9  ;;  %v515_v19 = vmax.f32 %v506_v11, 0.0 }
 0x20a   :  { %v520_v20 = vpack.c.bf16 %v514_v14, %v510_v12  ;;  %v519_v21 = vpack.c.bf16 %v513_v15, %v509_v13  ;;  %v712_v12 = vshrl.u32 %v711_v58, 7 }
 0x20b   :  { %v521_v22 = vpack.c.bf16 %v515_v19, %v511_v16  ;;  %v548_v24 = vand.u32 %v546_v18, %v518_v17  ;;  %v873_v19 = vmov 1966171168  }
 0x20c   :  { %v551_v23 = vand.u32 %v546_v18, %v519_v21  ;;  %v554_v26 = vand.u32 %v546_v18, %v520_v20  ;;  %v726_v20 = vunpack.c.l.s4 %v873_v19 }
 0x20d   :  { %v557_v25 = vand.u32 %v546_v18, %v521_v22 }
 0x20e   :  { %559 = vmatprep.subr.bf16.mxu0 %v551_v23  ;;  %v713_v23 = vsub.s32 0, %v712_v12 }
 0x20f   :  { %602 = vmatprep.subr.bf16.mxu1 %v557_v25  ;;  %560 = vmatpush1.bf16.msra.mxu0 %v548_v24 }
 0x210   :  { %603 = vmatpush1.bf16.msra.mxu1 %v554_v26  ;;  %v709_v26 = vpop.permute.xlu1 %708 }
 0x212   :  { %779 = vmatmul.mubr.msk.bf16.vlgmr.msra.gmra.mrb[12].mxu0 %vm539_vm5, %v846_v27 }
 0x213   :  { %780 = vmatmul.mubr.msk.bf16.vlgmr.msra.gmra.mrb[12].mxu1 %vm539_vm5, %v846_v27 }
 0x2e5   :  { %v593_v30 = vpop.f32.mrb[12].mxu0 }
 0x2e6   :  { %v594_v31 = vadd.f32 %v593_v30, %v527_v29  ;;  %v636_v32 = vpop.f32.mrb[12].mxu1  ;;  %v595_v33 = vpop.f32.mrb[13].mxu0 }
 0x2e7   :  { %v637_v34 = vadd.f32 %v636_v32, %v527_v29  ;;  %v596_v35 = vadd.f32 %v595_v33, %v527_v29  ;;  %v638_v36 = vpop.f32.mrb[13].mxu1  ;;  %v597_v37 = vpop.f32.mrb[14].mxu0 }
 0x2e8   :  { %v639_v38 = vadd.f32 %v638_v36, %v527_v29  ;;  %v598_v39 = vadd.f32 %v597_v37, %v532_v28  ;;  %v640_v40 = vpop.f32.mrb[14].mxu1  ;;  %v599_v41 = vpop.f32.mrb[15].mxu0  ;;  %v645_v42 = vmax.f32 %v594_v31, 0.0  ;;  %v727_v31 = vunpack.c.0.s8 %v726_v20 }
 0x2e9   :  { %v641_v43 = vadd.f32 %v640_v40, %v532_v28  ;;  %v600_v44 = vadd.f32 %v599_v41, %v532_v28  ;;  %v642_v45 = vpop.f32.mrb[15].mxu1  ;;  %v647_v46 = vmax.f32 %v637_v34, 0.0  ;;  %v646_v47 = vmax.f32 %v596_v35, 0.0 }
 0x2ea   :  { %v649_v48 = vmax.f32 %v598_v39, 0.0  ;;  %v643_v49 = vadd.f32 %v642_v45, %v532_v28  ;;  %v648_v51 = vmax.f32 %v639_v38, 0.0  ;;  %v665_v59 = vmul.f32 %v658_v54, %v645_v42 }
 0x2eb   :  { %v651_v52 = vmax.f32 %v641_v43, 0.0  ;;  %v650_v53 = vmax.f32 %v600_v44, 0.0  ;;  %v667_v62 = vmul.f32 %v658_v54, %v647_v46  ;;  %v666_v63 = vmul.f32 %v658_v54, %v646_v47 }
 0x2ec   :  { %v669_v55 = vmul.f32 %v663_v50, %v649_v48  ;;  %v652_v57 = vmax.f32 %v643_v49, 0.0  ;;  %v668_v2 = vmul.f32 %v658_v54, %v648_v51  ;;  %v714_v34 = vrot.slane %v709_v26, %v713_v23 }
 0x2ed   :  { %v671_v60 = vmul.f32 %v663_v50, %v651_v52  ;;  %v670_v61 = vmul.f32 %v663_v50, %v650_v53  ;;  %v730_v41 = vsub.s32 %v727_v31, %v712_v12 }
 0x2ee   :  { %v673_v0 = vsel %vm409_vm1, %v669_v55, 0.0  ;;  %v672_v1 = vmul.f32 %v663_v50, %v652_v57 }
 0x2ef   :  { %v674_v3 = vadd.f32 %v673_v0, %v665_v59  ;;  %v689_v4 = vsel %vm409_vm1, %v671_v60, 0.0  ;;  %v681_v5 = vsel %vm409_vm1, %v670_v61, 0.0 }
 0x2f0   :  { %v690_v6 = vadd.f32 %v689_v4, %v667_v62  ;;  %v682_v56 = vadd.f32 %v681_v5, %v666_v63  ;;  %v697_v8 = vsel %vm409_vm1, %v672_v1, 0.0 }
 0x2f1   :  { %v675_v7 = vrot.slane %v674_v3, 4  ;;  %v698_v9 = vadd.f32 %v697_v8, %v668_v2 }
 0x2f2   :  { %v691_v10 = vrot.slane %v690_v6, 4  ;;  %v683_v11 = vrot.slane %v682_v56, 4 }
 0x2f3   :  { %v676_v13 = vadd.f32 %v675_v7, %v674_v3  ;;  %v699_v14 = vrot.slane %v698_v9, 4 }
 0x2f4   :  { %v692_v15 = vadd.f32 %v691_v10, %v690_v6  ;;  %v684_v16 = vadd.f32 %v683_v11, %v682_v56 }
 0x2f5   :  { %v677_v17 = vrot.slane %v676_v13, 2  ;;  %v700_v18 = vadd.f32 %v699_v14, %v698_v9 }
 0x2f6   :  { %v693_v21 = vrot.slane %v692_v15, 2  ;;  %v685_v22 = vrot.slane %v684_v16, 2 }
 0x2f7   :  { %v678_v24 = vadd.f32 %v677_v17, %v676_v13  ;;  %v701_v25 = vrot.slane %v700_v18, 2 }
 0x2f8   :  { %v694_v27 = vadd.f32 %v693_v21, %v692_v15  ;;  %v686_v28 = vadd.f32 %v685_v22, %v684_v16 }
 0x2f9   :  { %v679_v29 = vrot.slane %v678_v24, 1  ;;  %v702_v30 = vadd.f32 %v701_v25, %v700_v18 }
 0x2fa   :  { %v695_v32 = vrot.slane %v694_v27, 1  ;;  %v687_v33 = vrot.slane %v686_v28, 1 }
 0x2fb   :  { %v680_v35 = vadd.f32 %v679_v29, %v678_v24  ;;  %v703_v36 = vrot.slane %v702_v30, 1 }
 0x2fc   :  { %v696_v37 = vadd.f32 %v695_v32, %v694_v27  ;;  %v688_v38 = vadd.f32 %v687_v33, %v686_v28 }
 0x2fd   :  { %v704_v39 = vadd.f32 %v703_v36, %v702_v30  ;;  %v715_v40 = vadd.f32 %v714_v34, %v680_v35 }
 0x2fe   :  { %v716_v42 = vadd.f32 %v714_v34, %v688_v38  ;;  %v717_v43 = vadd.f32 %v714_v34, %v696_v37 }
 0x2ff   :  { %v718_v44 = vadd.f32 %v714_v34, %v704_v39 }
 0x300   :  { %v723_v45 = vcombine.low %v715_v40, %v716_v42 }
 0x301   :  { %v724_v46 = vcombine.low %v717_v43, %v718_v44 }
 0x302   :  { %v731_v47 = vrot.slane %v723_v45, %v730_v41 }
 0x303   :  { %v738_v48 = vrot.slane %v724_v46, %v730_v41 }
 0x305   :  { %v739_v49 = vcombine.low %v731_v47, %v738_v48 }
 0x307   :  { %v746_v50 = vrot.slane %v739_v49, %v730_v41 }
 0x309   :  { %752 = vst.msk [vmem:[#allocation3] sm:$0xf] %vm750_vm6, %v746_v50 }
 0x30a   :  { %858 = shalt.err (!%p855_p4)
}
 0x30b   :  { %s859_s23 = scalar_lea.hbm %s1240_s9, 64 }
 0x30c   :  { %p860_p5 = scmp.ne.s32.totalorder %s1240_s9, %s859_s23  ;;  %p863_p6 = scmp.lt.u32.totalorder %s859_s23, %s1240_s9 }
 0x30e   :  { %p865_p7 = pnand %p863_p6, %p860_p5 }
 0x310   :  { %868 = shalt.err (!%p865_p7)
}
 0x311   :  { %762 = dma.vmem_to_hbm [thread:$0]  %s760_s20, 64, %s1240_s9, [#allocation4]  }
 0x312   :  { %869 = dma.done.wait [#allocation4], 64  }
 0x313   :  { %870 = vsyncadd [#allocation4], 4294967232 }
 0x314   :  { %766 = vsyncpa [#allocation4], 1 }

</bundles_post_ra>
